<compile_context>
chip_gen: v7x
topology: tpu7x:2x2x1
jax: 0.10.0
libtpu: 0.0.40
codegen_flags: <defaults>
</compile_context>

<pallas_src>
import jax
import jax.numpy as jnp
from jax.experimental import pallas as pl
from jax.experimental.pallas import tpu as pltpu


def _concat_kernel(e1_ref, e2_ref, out_ref):
    d1 = e1_ref.shape[1]
    # Static slices — zero-cost ref views. If D1 is not a multiple of 128 the
    # second store is a masked lane seam (correct, just not peak store BW).
    # TODO(synk): lane-align / pad D1 caller-side in production for unmasked vst.
    out_ref[:, :d1] = e1_ref[...]
    out_ref[:, d1:] = e2_ref[...]


def _sublane_multiple(dtype):
    # Sub-32-bit dtypes pack along sublanes: f32 -> 8, bf16 -> 16, int8/fp8 -> 32.
    return {4: 8, 2: 16, 1: 32}.get(jnp.dtype(dtype).itemsize, 8)


def _round_down_to(x, m):
    return max((x // m) * m, m)


def _round_up_to(x, m):
    return ((x + m - 1) // m) * m


def _vmem_budget_and_limit():
    """Generation-aware (budget for double-buffered live set, scoped limit)."""
    try:
        cap = int(pltpu.get_tpu_info().vmem_capacity_bytes)
    except Exception:  # interpret mode / unknown chip: be conservative (v7x per-TC)
        cap = 64 << 20
    if cap >= (96 << 20):          # v5e / v6e: 128 MiB physical VMEM
        budget = 48 << 20
    else:                          # v7x: 64 MiB per TensorCore
        budget = 40 << 20
    limit = min(cap, budget + (16 << 20))
    return budget, limit


def _is_multi_tensorcore():
    try:
        kind = jax.devices()[0].device_kind.lower()
    except Exception:
        return False
    return ("v7" in kind) or ("7x" in kind)


def _pick_tile_n(n, d_out, dtype, vmem_budget_bytes):
    """Rows per grid step: byte-targeted (~8 MiB output/block), VMEM-budget capped."""
    mult = _sublane_multiple(dtype)
    itemsize = jnp.dtype(dtype).itemsize
    row_out_bytes = d_out * itemsize
    # Double-buffered live set per row ~= 2 * (D1 + D2 + D_out) = 4 * D_out elems.
    rows_budget = max(vmem_budget_bytes // (4 * row_out_bytes), mult)
    # ~8 MiB of output per step puts the copy in the 85%+ HBM-roofline regime.
    rows_target = max((8 << 20) // row_out_bytes, mult)
    return _round_down_to(min(rows_budget, rows_target), mult)


def simple_concat(embed_1, embed_2, tile_n=None):
    """Pallas equivalent of SimpleConcat.forward: cat along dim=1."""
    assert embed_1.shape[0] == embed_2.shape[0], "batch dims must match"
    assert embed_1.dtype == embed_2.dtype
    n, d1 = embed_1.shape
    d2 = embed_2.shape[1]
    d_out = d1 + d2
    dtype = embed_1.dtype
    itemsize = jnp.dtype(dtype).itemsize
    mult = _sublane_multiple(dtype)
    out_shape = jax.ShapeDtypeStruct((n, d_out), dtype)

    budget, vmem_limit = _vmem_budget_and_limit()
    multi_tc = _is_multi_tensorcore()

    if tile_n is None:
        tile_n = _pick_tile_n(n, d_out, dtype, budget)
    else:
        # Validate user tile against the sublane packing multiple.
        tile_n = _round_down_to(int(tile_n), mult)

    # On a 2-TC chip keep at least two row blocks so both cores move data.
    if multi_tc and n >= 2 * mult:
        tile_n = min(tile_n, _round_up_to(pl.cdiv(n, 2), mult))

    if n <= tile_n:
        # Single block covering all rows: block == full dim is always layout-legal
        # regardless of N's divisibility by 8/16/32.
        tile_n = n

    steps = pl.cdiv(n, tile_n)
    grid = (steps,)

    # Deep pipelining only pays when blocks are small and there are several steps.
    out_block_bytes = tile_n * d_out * itemsize
    use_buffered = steps >= 3 and out_block_bytes < (1 << 20) and hasattr(pl, "Buffered")

    def _spec(cols):
        if use_buffered:
            return pl.BlockSpec((tile_n, cols), lambda i: (i, 0),
                                pipeline_mode=pl.Buffered(3))
        return pl.BlockSpec((tile_n, cols), lambda i: (i, 0))

    in_specs = [_spec(d1), _spec(d2)]
    out_specs = pl.BlockSpec((tile_n, d_out), lambda i: (i, 0))

    if multi_tc and hasattr(pltpu, "CORE_PARALLEL"):
        dim_sem = (pltpu.CORE_PARALLEL,)   # shard row grid across v7x's 2 TCs
    else:
        dim_sem = ("parallel",)            # near no-op on single-TC v5e/v6e

    cost = pl.CostEstimate(
        flops=0,
        transcendentals=0,
        bytes_accessed=2 * n * d_out * itemsize,  # read D1+D2, write D_out
    )

    return pl.pallas_call(
        _concat_kernel,
        out_shape=out_shape,
        grid=grid,
        in_specs=in_specs,
        out_specs=out_specs,
        compiler_params=pltpu.CompilerParams(
            dimension_semantics=dim_sem,
            vmem_limit_bytes=vmem_limit,
        ),
        cost_estimate=cost,
    )(embed_1, embed_2)


if __name__ == "__main__":
    key = jax.random.PRNGKey(0)
    k1, k2 = jax.random.split(key)

    # Small shapes consistent with the module: two embeddings sharing batch=8.
    embed_1 = jax.random.normal(k1, (8, 32), dtype=jnp.float32)
    embed_2 = jax.random.normal(k2, (8, 48), dtype=jnp.float32)

    out = jax.block_until_ready(simple_concat(embed_1, embed_2))
    ref = jnp.concatenate([embed_1, embed_2], axis=1)
    assert out.shape == (8, 80)
    assert jnp.allclose(out, ref), "mismatch vs reference concat"

    # Exercise the tiled multi-block path (grid=(4,), small blocks -> Buffered(3))
    # with lane-aligned feature widths (multiples of 128 -> unmasked stores).
    k3, k4 = jax.random.split(k2)
    a = jax.random.normal(k3, (32, 128), dtype=jnp.float32)
    b = jax.random.normal(k4, (32, 256), dtype=jnp.float32)
    out2 = jax.block_until_ready(simple_concat(a, b, tile_n=8))
    ref2 = jnp.concatenate([a, b], axis=1)
    assert out2.shape == (32, 384)
    assert jnp.allclose(out2, ref2), "mismatch vs reference concat (tiled path)"

    # Exercise the auto-tiling path end to end (single full-extent block here).
    out3 = jax.block_until_ready(simple_concat(a, b))
    assert jnp.allclose(out3, ref2), "mismatch vs reference concat (auto-tile path)"

    print("KERNEL_OK")
</pallas_src>

<mosaic_0001>
module attributes {stable_mosaic.version = 11 : i64} {
  func.func @_concat_kernel(%arg0: i32, %arg1: memref<8x32xf32, #tpu.memory_space<vmem>>, %arg2: memref<8x48xf32, #tpu.memory_space<vmem>>, %arg3: memref<8x80xf32, #tpu.memory_space<vmem>>) attributes {dimension_semantics = [#tpu.dimension_semantics<parallel>], iteration_bounds = array<i64: 1>, scalar_prefetch = 0 : i64, scratch_operands = 0 : i64, tpu.core_type = #tpu.core_type<tc>, window_params = [{transform_indices = @transform_0, window_bounds = array<i64: 8, 32>}, {transform_indices = @transform_1, window_bounds = array<i64: 8, 48>}, {transform_indices = @transform_2, window_bounds = array<i64: 8, 80>}]} {
    %c0 = arith.constant 0 : index
    %c0_0 = arith.constant 0 : index
    %0 = vector.load %arg1[%c0, %c0_0] : memref<8x32xf32, #tpu.memory_space<vmem>>, vector<8x32xf32>
    %c0_1 = arith.constant 0 : index
    %c0_2 = arith.constant 0 : index
    %1 = vector.load %arg3[%c0_1, %c0_2] : memref<8x80xf32, #tpu.memory_space<vmem>>, vector<8x32xf32>
    tpu.vector_store %arg3[%c0_1, %c0_2], %0 {strides = array<i32>} : memref<8x80xf32, #tpu.memory_space<vmem>>, vector<8x32xf32>,
    %c0_3 = arith.constant 0 : index
    %c0_4 = arith.constant 0 : index
    %2 = vector.load %arg2[%c0_3, %c0_4] : memref<8x48xf32, #tpu.memory_space<vmem>>, vector<8x48xf32>
    %c0_5 = arith.constant 0 : index
    %c32 = arith.constant 32 : index
    %3 = vector.load %arg3[%c0_5, %c32] : memref<8x80xf32, #tpu.memory_space<vmem>>, vector<8x48xf32>
    tpu.vector_store %arg3[%c0_5, %c32], %2 {strides = array<i32>} : memref<8x80xf32, #tpu.memory_space<vmem>>, vector<8x48xf32>,
    return
  }
  func.func @transform_0(%arg0: i32) -> (i32, i32) {
    %c0_i32 = arith.constant 0 : i32
    %c0_i32_0 = arith.constant 0 : i32
    return %arg0, %c0_i32 : i32, i32
  }
  func.func @transform_1(%arg0: i32) -> (i32, i32) {
    %c0_i32 = arith.constant 0 : i32
    %c0_i32_0 = arith.constant 0 : i32
    return %arg0, %c0_i32 : i32, i32
  }
  func.func @transform_2(%arg0: i32) -> (i32, i32) {
    %c0_i32 = arith.constant 0 : i32
    %c0_i32_0 = arith.constant 0 : i32
    return %arg0, %c0_i32 : i32, i32
  }
}

</mosaic_0001>

<bundles_post_ra>
// kernel: tpu_custom_call.1
= control target key start
LH: loop header
LB: loop body
LE: loop exit
PB: predicated region body
PF: predicated region fallthrough
CT: control target
= control target key end

     0   :  { %7 = vsyncpa [#allocation3], 0  ;;  %s193_s0 = inlined_call_operand.hbm [shape: f32[8,32], index: 0, kind: input, shape index: {}]   ;;  %s194_s1 = inlined_call_operand.hbm [shape: f32[8,48], index: 1, kind: input, shape index: {}]   ;;  %s195_s2 = inlined_call_operand.hbm [shape: f32[8,80], index: 2, kind: output, shape index: {}]  }
   0x1   :  { %8 = vsyncpa [#allocation6], 0 }
   0x2   :  { %9 = vsyncpa [#allocation4], 0  ;;  %s138_s9 = smov [#allocation2]   ;;  %s139_s11 = smov [#allocation5]  }
   0x3   :  { %s16_s10 = sshll.u32 %s138_s9, 4  ;;  %s26_s12 = sshll.u32 %s139_s11, 4  ;;  %s17_s10 = int_to_ptr.vmem [resolvable:$true] %s16_s10  ;;  %s27_s12 = int_to_ptr.vmem [resolvable:$true] %s26_s12 }
   0x4   :  { %s66_s15 = scalar_lea.hbm %s193_s0, 128 }
   0x5   :  { %p67_p0 = scmp.ne.s32.totalorder %s193_s0, %s66_s15  ;;  %p70_p1 = scmp.lt.u32.totalorder %s66_s15, %s193_s0 }
   0x7   :  { %p72_p2 = pnand %p70_p1, %p67_p0 }
   0x9   :  { %75 = shalt.err (!%p72_p2)
}
   0xa   :  { %s76_s20 = scalar_lea.vmem %s17_s10, 128  ;;  %p81_p4 = scmp.lt.s32.totalorder %s17_s10, %s17_s10 }
   0xb   :  { %p77_p3 = scmp.ne.s32.totalorder %s17_s10, %s76_s20  ;;  %p82_p5 = scmp.lt.s32.totalorder %s76_s20, %s76_s20 }
   0xd   :  { %p83_p6 = por %p82_p5, %p81_p4 }
   0xf   :  { %p84_p7 = pnand %p83_p6, %p77_p3 }
  0x11   :  { %87 = shalt.err (!%p84_p7)
}
  0x12   :  { %19 = dma.hbm_to_vmem [thread:$0]  %s193_s0, 128, %s17_s10, [#allocation3]  }
  0x13   :  { %s88_s25 = scalar_lea.hbm %s194_s1, 128 }
  0x14   :  { %p89_p8 = scmp.ne.s32.totalorder %s194_s1, %s88_s25  ;;  %p92_p9 = scmp.lt.u32.totalorder %s88_s25, %s194_s1 }
  0x16   :  { %p94_p10 = pnand %p92_p9, %p89_p8 }
  0x18   :  { %97 = shalt.err (!%p94_p10)
}
  0x19   :  { %s98_s30 = scalar_lea.vmem %s27_s12, 128  ;;  %p103_p12 = scmp.lt.s32.totalorder %s27_s12, %s27_s12 }
  0x1a   :  { %p99_p11 = scmp.ne.s32.totalorder %s27_s12, %s98_s30  ;;  %p104_p13 = scmp.lt.s32.totalorder %s98_s30, %s98_s30 }
  0x1c   :  { %p105_p0 = por %p104_p13, %p103_p12 }
  0x1e   :  { %p106_p1 = pnand %p105_p0, %p99_p11 }
  0x20   :  { %109 = shalt.err (!%p106_p1)
}
  0x21   :  { %29 = dma.hbm_to_vmem [thread:$0]  %s194_s1, 128, %s27_s12, [#allocation6]  }
  0x22   :  { %132 = dma.done.wait [#allocation3], 128  }
  0x23   :  { %133 = vsyncadd [#allocation3], 4294967168 }
  0x24   :  { %134 = dma.done.wait [#allocation6], 128  }
  0x25   :  { %135 = vsyncadd [#allocation6], 4294967168  ;;  %vm37_vm0 = vcmask 261120   ;;  %v39_v0 = vld [vmem:[#allocation5] sm:$0xff]  ;;  %v36_v1 = vld [vmem:[#allocation2] sm:$0xff]  ;;  %s140_s4 = smov 32  }
  0x26   :  { %41 = vrot.lane.b32.xlu0 %v39_v0, %s140_s4  ;;  %38 = vst.msk [vmem:[#allocation7] sm:$0xff] %vm37_vm0, %v36_v1  ;;  %s141_s5 = smov [#allocation7]   ;;  %vm44_vm1 = vcmask 654592  }
  0x27   :  { %s52_s6 = sshll.u32 %s141_s5, 4  ;;  %s53_s6 = int_to_ptr.vmem [resolvable:$true] %s52_s6 }
  0x28   :  { %s110_s7 = scalar_lea.vmem %s53_s6, 128  ;;  %p115_p3 = scmp.lt.s32.totalorder %s53_s6, %s53_s6 }
  0x29   :  { %p111_p2 = scmp.ne.s32.totalorder %s53_s6, %s110_s7  ;;  %p116_p4 = scmp.lt.s32.totalorder %s110_s7, %s110_s7 }
  0x2b   :  { %p117_p5 = por %p116_p4, %p115_p3 }
  0x2d   :  { %p118_p6 = pnand %p117_p5, %p111_p2 }
  0x98   :  { %v42_v2 = vpop.permute.xlu0 %41 }
  0x99   :  { %45 = vst.msk [vmem:[#allocation7] sm:$0xff] %vm44_vm1, %v42_v2 }
  0x9a   :  { %121 = shalt.err (!%p118_p6)
}
  0x9b   :  { %s122_s9 = scalar_lea.hbm %s195_s2, 128 }
  0x9c   :  { %p123_p7 = scmp.ne.s32.totalorder %s195_s2, %s122_s9  ;;  %p126_p8 = scmp.lt.u32.totalorder %s122_s9, %s195_s2 }
  0x9e   :  { %p128_p9 = pnand %p126_p8, %p123_p7 }
  0xa0   :  { %131 = shalt.err (!%p128_p9)
}
  0xa1   :  { %55 = dma.vmem_to_hbm [thread:$0]  %s53_s6, 128, %s195_s2, [#allocation4]  }
  0xa2   :  { %136 = dma.done.wait [#allocation4], 128  }
  0xa3   :  { %137 = vsyncadd [#allocation4], 4294967168 }
  0xa4   :  { %59 = vsyncpa [#allocation3], 1 }
  0xa5   :  { %60 = vsyncpa [#allocation6], 1 }
  0xa6   :  { %61 = vsyncpa [#allocation4], 1 }

</bundles_post_ra>
